<compile_context>
chip_gen: v6e
topology: v6e:2x2x1
jax: 0.10.0
libtpu: 0.0.40
codegen_flags: <defaults>
</compile_context>

<pallas_src>
import jax
import jax.numpy as jnp
from jax.experimental import pallas as pl
from jax.experimental.pallas import tpu as pltpu


def _pad_kernel(x_ref, o_ref):
    # x_ref: (TR, W) VMEM tile; o_ref: (TR, W + pad) VMEM tile.
    tr, w = x_ref.shape
    pad = o_ref.shape[-1] - w
    # Two slice stores: data stays in its original lane positions, only the
    # boundary vreg uses a masked store; no cross-lane concatenate.
    o_ref[:, :w] = x_ref[...]
    o_ref[:, w:] = jnp.zeros((tr, pad), dtype=o_ref.dtype)


def _pick_row_tile(rows: int, w_in: int, w_out: int, itemsize: int) -> int:
    """Row tile: multiple of the sublane pack, ~2 MiB combined in+out bytes."""
    sublane = {4: 8, 2: 16, 1: 32}.get(itemsize, 8)
    bytes_per_row = max((w_in + w_out) * itemsize, 1)
    target_bytes = 2 * 1024 * 1024  # keeps 2x double-buffered tiles « 16 MiB
    tr = (target_bytes // bytes_per_row) // sublane * sublane
    tr = max(tr, sublane)
    if tr >= rows:
        # Full-extent block is always legal regardless of sublane alignment.
        return rows
    return tr


def padding_layer(x: jax.Array, padding: int) -> jax.Array:
    """Equivalent of PaddingLayer(padding)(x) == F.pad(x, (0, padding))."""
    if padding == 0:
        return x

    orig_shape = x.shape
    w = orig_shape[-1]
    w_out = w + padding
    rows = 1
    for d in orig_shape[:-1]:
        rows *= d
    x2d = x.reshape(rows, w)

    itemsize = jnp.dtype(x.dtype).itemsize
    tr = _pick_row_tile(rows, w, w_out, itemsize)
    grid = (pl.cdiv(rows, tr),)

    cost = pl.CostEstimate(
        flops=0,
        transcendentals=0,
        bytes_accessed=rows * (w + w_out) * itemsize,
    )

    out2d = pl.pallas_call(
        _pad_kernel,
        out_shape=jax.ShapeDtypeStruct((rows, w_out), x.dtype),
        grid_spec=pltpu.PrefetchScalarGridSpec(
            num_scalar_prefetch=0,
            grid=grid,
            in_specs=[pl.BlockSpec((tr, w), lambda i: (i, 0))],
            out_specs=pl.BlockSpec((tr, w_out), lambda i: (i, 0)),
        ),
        compiler_params=pltpu.CompilerParams(
            dimension_semantics=("parallel",),
        ),
        cost_estimate=cost,
    )(x2d)

    return out2d.reshape(*orig_shape[:-1], w_out)


if __name__ == "__main__":
    # Small NCHW input consistent with the module's conv-style usage.
    key = jax.random.PRNGKey(0)
    N, C, H, W = 2, 4, 16, 16
    padding = 4  # module hyperparameter (deterministic, set in-script)

    x = jax.random.normal(key, (N, C, H, W), dtype=jnp.float32)

    out = padding_layer(x, padding)
    out = jax.block_until_ready(out)

    # Reference check against plain JAX pad (same semantics as F.pad(x,(0,p))).
    ref = jnp.pad(x, ((0, 0), (0, 0), (0, 0), (0, padding)))
    assert out.shape == (N, C, H, W + padding), out.shape
    assert jnp.allclose(out, ref), "mismatch vs reference pad"

    print("KERNEL_OK")
</pallas_src>

<mosaic_0001>
module attributes {stable_mosaic.version = 11 : i64} {
  func.func @_pad_kernel(%arg0: i32, %arg1: memref<128x16xf32, #tpu.memory_space<vmem>>, %arg2: memref<128x20xf32, #tpu.memory_space<vmem>>) attributes {dimension_semantics = [#tpu.dimension_semantics<parallel>], iteration_bounds = array<i64: 1>, scalar_prefetch = 0 : i64, scratch_operands = 0 : i64, tpu.core_type = #tpu.core_type<tc>, window_params = [{transform_indices = @transform_0, window_bounds = array<i64: 128, 16>}, {transform_indices = @transform_1, window_bounds = array<i64: 128, 20>}]} {
    %c0 = arith.constant 0 : index
    %c0_0 = arith.constant 0 : index
    %0 = vector.load %arg1[%c0, %c0_0] : memref<128x16xf32, #tpu.memory_space<vmem>>, vector<128x16xf32>
    %c0_1 = arith.constant 0 : index
    %c0_2 = arith.constant 0 : index
    %1 = vector.load %arg2[%c0_1, %c0_2] : memref<128x20xf32, #tpu.memory_space<vmem>>, vector<128x16xf32>
    tpu.vector_store %arg2[%c0_1, %c0_2], %0 {strides = array<i32>} : memref<128x20xf32, #tpu.memory_space<vmem>>, vector<128x16xf32>,
    %cst = arith.constant 0.000000e+00 : f32
    %2 = vector.broadcast %cst : f32 to vector<128x4xf32>
    %c0_3 = arith.constant 0 : index
    %c16 = arith.constant 16 : index
    %3 = vector.load %arg2[%c0_3, %c16] : memref<128x20xf32, #tpu.memory_space<vmem>>, vector<128x4xf32>
    tpu.vector_store %arg2[%c0_3, %c16], %2 {strides = array<i32>} : memref<128x20xf32, #tpu.memory_space<vmem>>, vector<128x4xf32>,
    return
  }
  func.func @transform_0(%arg0: i32) -> (i32, i32) {
    %c0_i32 = arith.constant 0 : i32
    %c0_i32_0 = arith.constant 0 : i32
    return %arg0, %c0_i32 : i32, i32
  }
  func.func @transform_1(%arg0: i32) -> (i32, i32) {
    %c0_i32 = arith.constant 0 : i32
    %c0_i32_0 = arith.constant 0 : i32
    return %arg0, %c0_i32 : i32, i32
  }
}

</mosaic_0001>

<bundles_post_ra>
// kernel: tpu_custom_call.1
= control target key start
LH: loop header
LB: loop body
LE: loop exit
PB: predicated region body
PF: predicated region fallthrough
CT: control target
= control target key end

     0   :  { %vm24_vm0 = vcmask 130048   ;;  %vm41_vm1 = vcmask 162944   ;;  %v63_v9 = vmov 0.0   ;;  %s250_s0 = inlined_call_operand.vmem [shape: f32[128,16], index: 0, kind: input, shape index: {}]   ;;  %s251_s1 = inlined_call_operand.vmem [shape: f32[128,20], index: 1, kind: output, shape index: {}]  }
   0x1   :  { %v8_v0 = vld [vmem:[%s250_s0] sm:$0xff]  ;;  %v9_v1 = vld [vmem:[%s250_s0 + $0x8] sm:$0xff]  ;;  %v10_v2 = vld [vmem:[%s250_s0 + $0x10] sm:$0xff] }
   0x2   :  { %25 = vst.msk [vmem:[%s251_s1] sm:$0xff] %vm24_vm0, %v8_v0  ;;  %26 = vst.msk [vmem:[%s251_s1 + $0x8] sm:$0xff] %vm24_vm0, %v9_v1  ;;  %v11_v3 = vld [vmem:[%s250_s0 + $0x18] sm:$0xff]  ;;  %v12_v4 = vld [vmem:[%s250_s0 + $0x20] sm:$0xff] }
   0x3   :  { %27 = vst.msk [vmem:[%s251_s1 + $0x10] sm:$0xff] %vm24_vm0, %v10_v2  ;;  %v13_v5 = vld [vmem:[%s250_s0 + $0x28] sm:$0xff]  ;;  %28 = vst.msk [vmem:[%s251_s1 + $0x18] sm:$0xff] %vm24_vm0, %v11_v3  ;;  %v14_v6 = vld [vmem:[%s250_s0 + $0x30] sm:$0xff] }
   0x4   :  { %29 = vst.msk [vmem:[%s251_s1 + $0x20] sm:$0xff] %vm24_vm0, %v12_v4  ;;  %30 = vst.msk [vmem:[%s251_s1 + $0x28] sm:$0xff] %vm24_vm0, %v13_v5  ;;  %v15_v7 = vld [vmem:[%s250_s0 + $0x38] sm:$0xff]  ;;  %v16_v8 = vld [vmem:[%s250_s0 + $0x40] sm:$0xff] }
   0x5   :  { %42 = vst.msk [vmem:[%s251_s1] sm:$0xff] %vm41_vm1, %v63_v9  ;;  %43 = vst.msk [vmem:[%s251_s1 + $0x8] sm:$0xff] %vm41_vm1, %v63_v9  ;;  %v17_v10 = vld [vmem:[%s250_s0 + $0x48] sm:$0xff]  ;;  %v18_v11 = vld [vmem:[%s250_s0 + $0x50] sm:$0xff] }
   0x6   :  { %44 = vst.msk [vmem:[%s251_s1 + $0x10] sm:$0xff] %vm41_vm1, %v63_v9  ;;  %v19_v12 = vld [vmem:[%s250_s0 + $0x58] sm:$0xff]  ;;  %45 = vst.msk [vmem:[%s251_s1 + $0x18] sm:$0xff] %vm41_vm1, %v63_v9  ;;  %v20_v13 = vld [vmem:[%s250_s0 + $0x60] sm:$0xff] }
   0x7   :  { %31 = vst.msk [vmem:[%s251_s1 + $0x30] sm:$0xff] %vm24_vm0, %v14_v6  ;;  %32 = vst.msk [vmem:[%s251_s1 + $0x38] sm:$0xff] %vm24_vm0, %v15_v7  ;;  %v21_v14 = vld [vmem:[%s250_s0 + $0x68] sm:$0xff]  ;;  %v22_v15 = vld [vmem:[%s250_s0 + $0x70] sm:$0xff] }
   0x8   :  { %33 = vst.msk [vmem:[%s251_s1 + $0x40] sm:$0xff] %vm24_vm0, %v16_v8  ;;  %34 = vst.msk [vmem:[%s251_s1 + $0x48] sm:$0xff] %vm24_vm0, %v17_v10  ;;  %v23_v16 = vld [vmem:[%s250_s0 + $0x78] sm:$0xff] }
   0x9   :  { %46 = vst.msk [vmem:[%s251_s1 + $0x20] sm:$0xff] %vm41_vm1, %v63_v9  ;;  %47 = vst.msk [vmem:[%s251_s1 + $0x28] sm:$0xff] %vm41_vm1, %v63_v9 }
   0xa   :  { %35 = vst.msk [vmem:[%s251_s1 + $0x50] sm:$0xff] %vm24_vm0, %v18_v11  ;;  %36 = vst.msk [vmem:[%s251_s1 + $0x58] sm:$0xff] %vm24_vm0, %v19_v12 }
   0xb   :  { %48 = vst.msk [vmem:[%s251_s1 + $0x30] sm:$0xff] %vm41_vm1, %v63_v9  ;;  %49 = vst.msk [vmem:[%s251_s1 + $0x38] sm:$0xff] %vm41_vm1, %v63_v9 }
   0xc   :  { %50 = vst.msk [vmem:[%s251_s1 + $0x40] sm:$0xff] %vm41_vm1, %v63_v9  ;;  %51 = vst.msk [vmem:[%s251_s1 + $0x48] sm:$0xff] %vm41_vm1, %v63_v9 }
   0xd   :  { %37 = vst.msk [vmem:[%s251_s1 + $0x60] sm:$0xff] %vm24_vm0, %v20_v13  ;;  %38 = vst.msk [vmem:[%s251_s1 + $0x68] sm:$0xff] %vm24_vm0, %v21_v14 }
   0xe   :  { %39 = vst.msk [vmem:[%s251_s1 + $0x70] sm:$0xff] %vm24_vm0, %v22_v15  ;;  %40 = vst.msk [vmem:[%s251_s1 + $0x78] sm:$0xff] %vm24_vm0, %v23_v16 }
   0xf   :  { %52 = vst.msk [vmem:[%s251_s1 + $0x50] sm:$0xff] %vm41_vm1, %v63_v9  ;;  %53 = vst.msk [vmem:[%s251_s1 + $0x58] sm:$0xff] %vm41_vm1, %v63_v9 }
  0x10   :  { %54 = vst.msk [vmem:[%s251_s1 + $0x60] sm:$0xff] %vm41_vm1, %v63_v9  ;;  %55 = vst.msk [vmem:[%s251_s1 + $0x68] sm:$0xff] %vm41_vm1, %v63_v9 }
  0x11   :  { %56 = vst.msk [vmem:[%s251_s1 + $0x70] sm:$0xff] %vm41_vm1, %v63_v9  ;;  %57 = vst.msk [vmem:[%s251_s1 + $0x78] sm:$0xff] %vm41_vm1, %v63_v9 }

</bundles_post_ra>
